<compile_context>
chip_gen: v7x
topology: tpu7x:2x2x1
jax: 0.10.0
libtpu: 0.0.40
codegen_flags: <defaults>
</compile_context>

<pallas_src>
import functools

import jax
import jax.numpy as jnp
from jax.experimental import pallas as pl
from jax.experimental.pallas import tpu as pltpu

_PACK = 8  # batch rows folded into the MXU K dimension


def _round_up(n, m):
    return ((n + m - 1) // m) * m


def _ufdecision_kernel(x_ref, w1_ref, b1_ref, w2_ref, b2_ref, o_ref):
    # x_ref : (TBP, P*D)  packed batch tile (P logical rows per packed row)
    # w1_ref: (P*D, P*H)  bf16 block-diagonal first-layer weight (resident)
    # b1_ref: (1, P*H)    f32 tiled first-layer bias (resident)
    # w2_ref: (P*H, P)    bf16 block-diagonal second-layer weight (resident)
    # b2_ref: (1, 1)      f32 second-layer bias (resident)
    # o_ref : (TBP, P)    f32, P logical outputs per packed row
    xb = x_ref[...].astype(jnp.bfloat16)                 # bf16 MXU inputs
    h = jnp.dot(xb, w1_ref[...], preferred_element_type=jnp.float32)
    h = jnp.maximum(h + b1_ref[...], 0.0)                # bias + ReLU, full-lane VPU
    out = jnp.dot(h.astype(jnp.bfloat16), w2_ref[...],
                  preferred_element_type=jnp.float32) + b2_ref[...]
    o_ref[...] = out.astype(o_ref.dtype)


@functools.partial(jax.jit, static_argnames=("block_rows",))
def ufdecision_forward(x, w1, b1, w2, b2, *, block_rows=65536):
    """x: (B, D); w1: (D, H); b1: (H,); w2: (H, 1); b2: (1,). Returns (B, 1) f32."""
    B, D = x.shape
    H = w1.shape[1]
    P = _PACK

    # Accept f32 or bf16 x directly (no forced wrapper cast over the big array).
    if x.dtype not in (jnp.float32, jnp.bfloat16):
        x = x.astype(jnp.float32)

    # Pad batch only to a multiple of the pack factor (<= 7 rows) -- never to a
    # full tile multiple, so we do not double HBM traffic with jnp.pad.
    b_pad = _round_up(B, P)
    if b_pad != B:
        x = jnp.pad(x, ((0, b_pad - B), (0, 0)))
    B8 = b_pad // P

    # Free row-major reshape: P consecutive batch rows -> one packed row.
    x_p = x.reshape(B8, P * D)

    # Block-diagonal weights (tiny, built once per trace), bf16 for the MXU.
    eye = jnp.eye(P, dtype=jnp.float32)
    w1bd = jnp.kron(eye, w1.astype(jnp.float32)).astype(jnp.bfloat16)   # (P*D, P*H)
    w2bd = jnp.kron(eye, w2.astype(jnp.float32)).astype(jnp.bfloat16)   # (P*H, P)
    b1t = jnp.tile(b1.astype(jnp.float32).reshape(1, H), (1, P))        # (1, P*H)
    b2_2d = b2.astype(jnp.float32).reshape(1, 1)

    # Packed-row tile size (~block_rows logical rows per grid step, 16-aligned
    # so f32/bf16 blocks stay sublane-aligned).  Single full-extent tile for
    # small batches; ragged last block otherwise (handled by Pallas).
    tbp = max(16, (block_rows // (P * 16)) * 16)
    if B8 <= tbp:
        tbp = B8
    n_tiles = pl.cdiv(B8, tbp)

    out_p = pl.pallas_call(
        _ufdecision_kernel,
        out_shape=jax.ShapeDtypeStruct((B8, P), jnp.float32),
        grid=(n_tiles,),
        in_specs=[
            pl.BlockSpec((tbp, P * D), lambda i: (i, 0)),    # streamed packed x tile
            pl.BlockSpec((P * D, P * H), lambda i: (0, 0)),  # resident weights/biases
            pl.BlockSpec((1, P * H), lambda i: (0, 0)),
            pl.BlockSpec((P * H, P), lambda i: (0, 0)),
            pl.BlockSpec((1, 1), lambda i: (0, 0)),
        ],
        out_specs=pl.BlockSpec((tbp, P), lambda i: (i, 0)),
        compiler_params=pltpu.CompilerParams(
            dimension_semantics=("parallel",),   # megacore / v7x dual-TC sharding
            vmem_limit_bytes=48 << 20,           # fits v5e / v6e / v7x
        ),
    )(x_p, w1bd, b1t, w2bd, b2_2d)

    # Unpack: packed row r holds outputs for logical rows [P*r, P*r + P).
    return out_p.reshape(b_pad, 1)[:B]


def init_params(key, input_dim, hidden=32):
    """Deterministic init mimicking PyTorch Linear default (uniform +/- 1/sqrt(fan_in))."""
    k1, k2, k3, k4 = jax.random.split(key, 4)
    bound1 = 1.0 / jnp.sqrt(input_dim)
    bound2 = 1.0 / jnp.sqrt(hidden)
    w1 = jax.random.uniform(k1, (input_dim, hidden), jnp.float32, -bound1, bound1)
    b1 = jax.random.uniform(k2, (hidden,), jnp.float32, -bound1, bound1)
    w2 = jax.random.uniform(k3, (hidden, 1), jnp.float32, -bound2, bound2)
    b2 = jax.random.uniform(k4, (1,), jnp.float32, -bound2, bound2)
    return w1, b1, w2, b2


if __name__ == "__main__":
    key = jax.random.PRNGKey(0)
    k_x, k_p, k_x2 = jax.random.split(key, 3)

    batch, input_dim = 8, 16
    x = jax.random.normal(k_x, (batch, input_dim), jnp.float32)
    w1, b1, w2, b2 = init_params(k_p, input_dim)

    # bf16 MXU inputs with f32 accumulation -> small deviation vs f32 reference.
    TOL = 5e-2

    out = jax.block_until_ready(ufdecision_forward(x, w1, b1, w2, b2))
    ref = jnp.maximum(x @ w1 + b1, 0.0) @ w2 + b2
    assert out.shape == (batch, 1)
    assert jnp.allclose(out, ref, atol=TOL, rtol=TOL)

    # Multi-tile + ragged path: B not a multiple of 8 (small pad to pack
    # factor), grid > 1, ragged last block handled by Pallas partial-block DMA.
    batch2 = 3001
    x2 = jax.random.normal(k_x2, (batch2, input_dim), jnp.float32)
    out2 = jax.block_until_ready(
        ufdecision_forward(x2, w1, b1, w2, b2, block_rows=2048))
    ref2 = jnp.maximum(x2 @ w1 + b1, 0.0) @ w2 + b2
    assert out2.shape == (batch2, 1)
    assert jnp.allclose(out2, ref2, atol=TOL, rtol=TOL)

    print("KERNEL_OK")
</pallas_src>

<mosaic_0001>
module attributes {stable_mosaic.version = 11 : i64} {
  func.func @_ufdecision_kernel(%arg0: i32, %arg1: memref<1x128xf32, #tpu.memory_space<vmem>>, %arg2: memref<128x256xbf16, #tpu.memory_space<vmem>>, %arg3: memref<1x256xf32, #tpu.memory_space<vmem>>, %arg4: memref<256x8xbf16, #tpu.memory_space<vmem>>, %arg5: memref<1x1xf32, #tpu.memory_space<vmem>>, %arg6: memref<1x8xf32, #tpu.memory_space<vmem>>) attributes {dimension_semantics = [#tpu.dimension_semantics<parallel>], iteration_bounds = array<i64: 1>, scalar_prefetch = 0 : i64, scratch_operands = 0 : i64, tpu.core_type = #tpu.core_type<tc>, window_params = [{transform_indices = @transform_0, window_bounds = array<i64: 1, 128>}, {pipeline_mode = #tpu.pipeline_mode<synchronous>, transform_indices = @transform_1, window_bounds = array<i64: 128, 256>}, {pipeline_mode = #tpu.pipeline_mode<synchronous>, transform_indices = @transform_2, window_bounds = array<i64: 1, 256>}, {pipeline_mode = #tpu.pipeline_mode<synchronous>, transform_indices = @transform_3, window_bounds = array<i64: 256, 8>}, {pipeline_mode = #tpu.pipeline_mode<synchronous>, transform_indices = @transform_4, window_bounds = array<i64: 1, 1>}, {transform_indices = @transform_5, window_bounds = array<i64: 1, 8>}]} {
    %c0 = arith.constant 0 : index
    %c0_0 = arith.constant 0 : index
    %0 = vector.load %arg1[%c0, %c0_0] : memref<1x128xf32, #tpu.memory_space<vmem>>, vector<1x128xf32>
    %1 = arith.truncf %0 : vector<1x128xf32> to vector<1x128xbf16>
    %c0_1 = arith.constant 0 : index
    %c0_2 = arith.constant 0 : index
    %2 = vector.load %arg2[%c0_1, %c0_2] : memref<128x256xbf16, #tpu.memory_space<vmem>>, vector<128x256xbf16>
    %cst = arith.constant dense<0.000000e+00> : vector<1x256xf32>
    %3 = tpu.matmul %1, %2, %cst {dimension_numbers = #tpu.dot_dimension_numbers<[1], [0], [0], [1], [0, 0, 1, 1], [], []>} : vector<1x128xbf16>, vector<128x256xbf16>, vector<1x256xf32> -> vector<1x256xf32>
    %c0_3 = arith.constant 0 : index
    %c0_4 = arith.constant 0 : index
    %4 = vector.load %arg3[%c0_3, %c0_4] : memref<1x256xf32, #tpu.memory_space<vmem>>, vector<1x256xf32>
    %5 = arith.addf %3, %4 : vector<1x256xf32>
    %cst_5 = arith.constant 0.000000e+00 : f32
    %6 = vector.broadcast %cst_5 : f32 to vector<1x256xf32>
    %7 = arith.maximumf %5, %6 : vector<1x256xf32>
    %8 = arith.truncf %7 : vector<1x256xf32> to vector<1x256xbf16>
    %c0_6 = arith.constant 0 : index
    %c0_7 = arith.constant 0 : index
    %9 = vector.load %arg4[%c0_6, %c0_7] : memref<256x8xbf16, #tpu.memory_space<vmem>>, vector<256x8xbf16>
    %cst_8 = arith.constant dense<0.000000e+00> : vector<1x8xf32>
    %10 = tpu.matmul %8, %9, %cst_8 {dimension_numbers = #tpu.dot_dimension_numbers<[1], [0], [0], [1], [0, 0, 1, 1], [], []>} : vector<1x256xbf16>, vector<256x8xbf16>, vector<1x8xf32> -> vector<1x8xf32>
    %c0_9 = arith.constant 0 : index
    %c0_10 = arith.constant 0 : index
    %11 = vector.load %arg5[%c0_9, %c0_10] : memref<1x1xf32, #tpu.memory_space<vmem>>, vector<1x1xf32>
    %12 = vector.broadcast %11 : vector<1x1xf32> to vector<1x8xf32>
    %13 = arith.addf %10, %12 : vector<1x8xf32>
    %c0_11 = arith.constant 0 : index
    %c0_12 = arith.constant 0 : index
    %14 = vector.load %arg6[%c0_11, %c0_12] : memref<1x8xf32, #tpu.memory_space<vmem>>, vector<1x8xf32>
    tpu.vector_store %arg6[%c0_11, %c0_12], %13 {strides = array<i32>} : memref<1x8xf32, #tpu.memory_space<vmem>>, vector<1x8xf32>,
    return
  }
  func.func @transform_0(%arg0: i32) -> (i32, i32) {
    %c0_i32 = arith.constant 0 : i32
    %c0_i32_0 = arith.constant 0 : i32
    return %arg0, %c0_i32 : i32, i32
  }
  func.func @transform_1(%arg0: i32) -> (i32, i32) {
    %c0_i32 = arith.constant 0 : i32
    %c0_i32_0 = arith.constant 0 : i32
    %c0_i32_1 = arith.constant 0 : i32
    return %c0_i32, %c0_i32_0 : i32, i32
  }
  func.func @transform_2(%arg0: i32) -> (i32, i32) {
    %c0_i32 = arith.constant 0 : i32
    %c0_i32_0 = arith.constant 0 : i32
    %c0_i32_1 = arith.constant 0 : i32
    return %c0_i32, %c0_i32_0 : i32, i32
  }
  func.func @transform_3(%arg0: i32) -> (i32, i32) {
    %c0_i32 = arith.constant 0 : i32
    %c0_i32_0 = arith.constant 0 : i32
    %c0_i32_1 = arith.constant 0 : i32
    return %c0_i32, %c0_i32_0 : i32, i32
  }
  func.func @transform_4(%arg0: i32) -> (i32, i32) {
    %c0_i32 = arith.constant 0 : i32
    %c0_i32_0 = arith.constant 0 : i32
    %c0_i32_1 = arith.constant 0 : i32
    return %c0_i32, %c0_i32_0 : i32, i32
  }
  func.func @transform_5(%arg0: i32) -> (i32, i32) {
    %c0_i32 = arith.constant 0 : i32
    %c0_i32_0 = arith.constant 0 : i32
    return %arg0, %c0_i32 : i32, i32
  }
}

</mosaic_0001>

<bundles_post_ra>
// kernel: ufdecision_forward.1
= control target key start
LH: loop header
LB: loop body
LE: loop exit
PB: predicated region body
PF: predicated region fallthrough
CT: control target
= control target key end

     0   :  { %s643_s0 = inlined_call_operand.vmem [shape: f32[1,128], index: 0, kind: input, shape index: {}]   ;;  %s644_s1 = inlined_call_operand.vmem [shape: bf16[128,256], index: 1, kind: input, shape index: {}]   ;;  %s645_s2 = inlined_call_operand.vmem [shape: f32[1,256], index: 2, kind: input, shape index: {}]   ;;  %s646_s3 = inlined_call_operand.vmem [shape: bf16[256,8], index: 3, kind: input, shape index: {}]   ;;  %s647_s4 = inlined_call_operand.<no memory space> [shape: f32[1,1], index: 4, kind: input, shape index: {}]   ;;  %s648_s5 = inlined_call_operand.hbm [shape: f32[1,8], index: 5, kind: output, shape index: {}]  }
   0x1   :  { %v10_v0 = vstv %s647_s4 }
   0x2   :  { %11 = vst [vmem:[#allocation2] sm:$0x1] %v10_v0 }
   0x3   :  { %v430_v1 = vld [vmem:[%s644_s1 + $0x4] ss:$8 sps:$4 sm:$0xff]   ;;  %v432_v2 = vld [vmem:[%s644_s1] ss:$8 sps:$4 sm:$0xff]   ;;  %v494_v3 = vmov 0   ;;  %v458_v16 = vld [vmem:[%s646_s3 + $0x50] sm:$0xff]  }
   0x4   :  { %166 = vmatprep.mubr.bf16.mxu0 %v494_v3  ;;  %429 = vset.pattern.permute.xlu0 %v494_v3  ;;  %v433_v4 = vld [vmem:[%s644_s1 + $0x14] ss:$8 sps:$4 sm:$0xff]   ;;  %v435_v5 = vld [vmem:[%s644_s1 + $0x10] ss:$8 sps:$4 sm:$0xff]   ;;  %v436_v6 = vld [vmem:[%s644_s1 + $0x24] ss:$8 sps:$4 sm:$0xff]  }
   0x5   :  { %134 = vmatprep.subr.bf16.mxu0 %v430_v1  ;;  %v438_v7 = vld [vmem:[%s644_s1 + $0x20] ss:$8 sps:$4 sm:$0xff]   ;;  %v439_v8 = vld [vmem:[%s644_s1 + $0x34] ss:$8 sps:$4 sm:$0xff]   ;;  %v441_v9 = vld [vmem:[%s644_s1 + $0x30] ss:$8 sps:$4 sm:$0xff]  }
   0x6   :  { %135 = vmatpush1.bf16.msra.mxu0 %v432_v2  ;;  %v442_v10 = vld [vmem:[%s644_s1 + $0x44] ss:$8 sps:$4 sm:$0xff]   ;;  %v444_v13 = vld [vmem:[%s644_s1 + $0x40] ss:$8 sps:$4 sm:$0xff]   ;;  %v445_v17 = vld [vmem:[%s644_s1 + $0x54] ss:$8 sps:$4 sm:$0xff]  }
   0x7   :  { %136 = vmatprep.subr.bf16.mxu0 %v433_v4  ;;  %v454_v11 = vld [vmem:[%s646_s3 + $0x40] sm:$0xff]   ;;  %v456_v14 = vld [vmem:[%s646_s3 + $0x48] sm:$0xff]   ;;  %v447_v18 = vld [vmem:[%s644_s1 + $0x50] ss:$8 sps:$4 sm:$0xff]  }
   0x8   :  { %v455_v12 = vld [vmem:[%s646_s3] sm:$0xff]   ;;  %405 = vmatprep.subr.bf16.mxu1 %v454_v11  ;;  %v457_v15 = vld [vmem:[%s646_s3 + $0x8] sm:$0xff]   ;;  %v459_v19 = vld [vmem:[%s646_s3 + $0x10] sm:$0xff]  }
   0x9   :  { %406 = vmatpush3.bf16.msra.mxu1 %v455_v12  ;;  %v460_v20 = vld [vmem:[%s646_s3 + $0x58] sm:$0xff]   ;;  %v448_v21 = vld [vmem:[%s644_s1 + $0x64] ss:$8 sps:$4 sm:$0xff]   ;;  %v450_v22 = vld [vmem:[%s644_s1 + $0x60] ss:$8 sps:$4 sm:$0xff]  }
   0xa   :  { %137 = vmatpush1.bf16.msra.mxu0 %v435_v5  ;;  %407 = vmatprep.subr.bf16.mxu1 %v456_v14  ;;  %v451_v23 = vld [vmem:[%s644_s1 + $0x74] ss:$8 sps:$4 sm:$0xff]   ;;  %v462_v25 = vld [vmem:[%s646_s3 + $0x60] sm:$0xff]  }
   0xb   :  { %138 = vmatprep.subr.bf16.mxu0 %v436_v6  ;;  %v461_v24 = vld [vmem:[%s646_s3 + $0x18] sm:$0xff]   ;;  %v463_v26 = vld [vmem:[%s646_s3 + $0x20] sm:$0xff]  }
   0xd   :  { %408 = vmatpush3.bf16.msra.mxu1 %v457_v15 }
   0xe   :  { %139 = vmatpush1.bf16.msra.mxu0 %v438_v7  ;;  %409 = vmatprep.subr.bf16.mxu1 %v458_v16 }
   0xf   :  { %140 = vmatprep.subr.bf16.mxu0 %v439_v8 }
  0x11   :  { %410 = vmatpush3.bf16.msra.mxu1 %v459_v19 }
  0x12   :  { %141 = vmatpush1.bf16.msra.mxu0 %v441_v9  ;;  %411 = vmatprep.subr.bf16.mxu1 %v460_v20 }
  0x13   :  { %142 = vmatprep.subr.bf16.mxu0 %v442_v10 }
  0x15   :  { %412 = vmatpush3.bf16.msra.mxu1 %v461_v24 }
  0x16   :  { %143 = vmatpush1.bf16.msra.mxu0 %v444_v13 }
  0x17   :  { %144 = vmatprep.subr.bf16.mxu0 %v445_v17 }
  0x1a   :  { %145 = vmatpush1.bf16.msra.mxu0 %v447_v18 }
  0x1b   :  { %146 = vmatprep.subr.bf16.mxu0 %v448_v21 }
  0x1c   :  { %12 = vsyncpa [#allocation4], 0  ;;  %v453_v27 = vld [vmem:[%s644_s1 + $0x70] ss:$8 sps:$4 sm:$0xff]   ;;  %v24_v28 = vld [vmem:[%s643_s0] sm:$0x1]  ;;  %413 = vmatprep.subr.bf16.mxu1 %v462_v25  ;;  %v124_v37 = vlaneseq }
  0x1d   :  { %v464_v29 = vld [vmem:[%s646_s3 + $0x68] sm:$0xff]   ;;  %v25_v30 = vpack.c.bf16 %v24_v28, %v24_v28  ;;  %414 = vmatpush3.bf16.msra.mxu1 %v463_v26  ;;  %v466_v32 = vld [vmem:[%s646_s3 + $0x70] sm:$0xff]   ;;  %v468_v34 = vld [vmem:[%s646_s3 + $0x78] sm:$0xff]   ;;  %vm357_vm0 = vcmask 57344  }
  0x1e   :  { %147 = vmatpush1.bf16.msra.mxu0 %v450_v22  ;;  %v465_v31 = vld [vmem:[%s646_s3 + $0x28] sm:$0xff]   ;;  %415 = vmatprep.subr.bf16.mxu1 %v464_v29  ;;  %v467_v33 = vld [vmem:[%s646_s3 + $0x30] sm:$0xff]   ;;  %v469_v35 = vld [vmem:[%s646_s3 + $0x38] sm:$0xff]   ;;  %v125_v38 = vshrl.u32 %v124_v37, 7 }
  0x1f   :  { %148 = vmatprep.subr.bf16.mxu0 %v451_v23  ;;  %v211_v36 = vld [vmem:[#allocation2] sm:$0x1] }
  0x20   :  { %214 = vperm.xlu0 %429, %v211_v36   ;;  %v126_v39 = vsub.s32 0, %v125_v38  ;;  %v42_v40 = vld [vmem:[%s645_s2] sm:$0x3]  ;;  %v130_v41 = vsub.s32 1, %v125_v38  ;;  %s495_s2 = smov [#allocation3]  }
  0x21   :  { %416 = vmatpush3.bf16.msra.mxu1 %v465_v31  ;;  %s365_s3 = sshll.u32 %s495_s2, 4  ;;  %s366_s3 = int_to_ptr.vmem [resolvable:$true] %s365_s3 }
  0x22   :  { %149 = vmatpush1.bf16.msra.mxu0 %v453_v27  ;;  %417 = vmatprep.subr.bf16.mxu1 %v466_v32  ;;  %v127_v42 = vrot.slane %v42_v40, %v126_v39  ;;  %v131_v43 = vrot.slane %v42_v40, %v130_v41  ;;  %s470_s8 = scalar_lea.vmem %s366_s3, 16  ;;  %s474_s9 = scalar_lea.vmem %s366_s3, 32 }
  0x23   :  { %p471_p0 = scmp.ne.s32.totalorder %s366_s3, %s470_s8  ;;  %p475_p1 = scmp.lt.s32.totalorder %s366_s3, %s366_s3 }
  0x24   :  { %p476_p2 = scmp.lt.s32.totalorder %s474_s9, %s470_s8 }
  0x25   :  { %167 = vmatmul.mubr.bf16.vlgmr.msra.gmra.mrb[0].mxu0 %v25_v30  ;;  %418 = vmatpush3.bf16.msra.mxu1 %v467_v33 }
  0x26   :  { %419 = vmatprep.subr.bf16.mxu1 %v468_v34  ;;  %p477_p3 = por %p476_p2, %p475_p1 }
  0x28   :  { %p478_p4 = pnand %p477_p3, %p471_p0 }
  0x29   :  { %420 = vmatpush3.bf16.msra.mxu1 %v469_v35 }
  0x9f   :  { %v215_v54 = vpop.permute.xlu0 %214 }
  0xa0   :  { %v220_v56 = vrot.slane %v215_v54, %v126_v39 }
  0xf8   :  { %v168_v44 = vpop.f32.mrb[0].mxu0 }
  0xf9   :  { %v169_v45 = vadd.f32 %v168_v44, %v127_v42  ;;  %v170_v46 = vpop.f32.mrb[1].mxu0 }
  0xfa   :  { %v171_v47 = vadd.f32 %v170_v46, %v131_v43  ;;  %v172_v48 = vpop.f32.mrb[2].mxu0 }
  0xfb   :  { %v175_v49 = vmax.f32 %v169_v45, 0.0  ;;  %v173_v50 = vpop.f32.mrb[3].mxu0 }
  0xfc   :  { %v176_v51 = vmax.f32 %v171_v47, 0.0 }
  0xfd   :  { %v177_v53 = vpack.c.bf16 %v175_v49, %v175_v49 }
  0xfe   :  { %v178_v52 = vpack.c.bf16 %v176_v51, %v176_v51 }
 0x100   :  { %349 = vmatprep.mubr.bf16.mxu1 %v178_v52 }
 0x101   :  { %350 = vmatmul.mubr.bf16.vlgmr.msra.gmra.mrb[0].mxu1 %v177_v53 }
 0x1d4   :  { %v421_v55 = vpop.f32.mrb[0].mxu1 }
 0x1d5   :  { %v422_v57 = vpop.f32.mrb[1].mxu1 }
 0x1d6   :  { %v423_v58 = vadd.f32 %v422_v57, %v421_v55  ;;  %v424_v59 = vpop.f32.mrb[2].mxu1 }
 0x1d7   :  { %v425_v60 = vpop.f32.mrb[3].mxu1 }
 0x1d8   :  { %v352_v61 = vadd.f32 %v423_v58, %v220_v56 }
 0x1da   :  { %358 = vst.msk [vmem:[#allocation3] sm:$0x1] %vm357_vm0, %v352_v61 }
 0x1db   :  { %481 = shalt.err (!%p478_p4)
}
 0x1dc   :  { %s482_s12 = scalar_lea.hbm %s648_s5, 16 }
 0x1dd   :  { %p483_p5 = scmp.ne.s32.totalorder %s648_s5, %s482_s12  ;;  %p486_p6 = scmp.lt.u32.totalorder %s482_s12, %s648_s5 }
 0x1df   :  { %p488_p7 = pnand %p486_p6, %p483_p5 }
 0x1e1   :  { %491 = shalt.err (!%p488_p7)
}
 0x1e2   :  { %368 = dma.vmem_to_hbm [thread:$0]  %s366_s3, 16, %s648_s5, [#allocation4]  }
 0x1e3   :  { %492 = dma.done.wait [#allocation4], 16  }
 0x1e4   :  { %493 = vsyncadd [#allocation4], 4294967280 }
 0x1e5   :  { %372 = vsyncpa [#allocation4], 1 }

</bundles_post_ra>
